<compile_context>
chip_gen: v5e
topology: v5e:2x2
jax: 0.10.0
libtpu: 0.0.40
codegen_flags: <defaults>
</compile_context>

<pallas_src>
import functools

import jax
import jax.numpy as jnp
from jax.experimental import pallas as pl
from jax.experimental.pallas import tpu as pltpu


def _round_up(n, m):
    return ((n + m - 1) // m) * m


# ---------------------------------------------------------------------------
# Kernel: feature-major MLP on a (D_total, TILE_N) tile.
#   h = relu(W0 @ x + b0); h = relu(W1 @ h + b1); h = W2 @ h + b2
# W0 already contains the folded embedding and zeros for ignore columns.
# Output rows: [x[ignore_dims, :], h]  -> (num_ignore + out_dim, TILE_N).
# ---------------------------------------------------------------------------
def _mlp_kernel(
    x_ref,            # (D_total, TILE_N)   feature-major input rows
    w0_ref, b0_ref,   # (W, D_total), (W, 1)   folded emb+L0, ignore cols = 0
    w1_ref, b1_ref,   # (W, W),       (W, 1)
    w2_ref, b2_ref,   # (O, W),       (O, 1)
    out_ref,          # (num_ignore + O, TILE_N)
    *, ignore_dims,
):
    x = x_ref[...].astype(jnp.float32)                                  # dense lanes

    h = jnp.dot(w0_ref[...], x, preferred_element_type=jnp.float32) + b0_ref[...]
    h = jnp.maximum(h, 0.0)
    h = jnp.dot(w1_ref[...], h, preferred_element_type=jnp.float32) + b1_ref[...]
    h = jnp.maximum(h, 0.0)
    h = jnp.dot(w2_ref[...], h, preferred_element_type=jnp.float32) + b2_ref[...]

    num_ignore = len(ignore_dims)
    # Fused passthrough of ignored feature rows (same lane tile -> free copy).
    for k, d in enumerate(ignore_dims):
        out_ref[k:k + 1, :] = x_ref[d:d + 1, :].astype(out_ref.dtype)
    out_ref[num_ignore:, :] = h.astype(out_ref.dtype)


# ---------------------------------------------------------------------------
# Wrapper
# ---------------------------------------------------------------------------
@functools.partial(jax.jit, static_argnames=("ignore_dims", "tile_n"))
def mlp_with_embedding(x, params, ignore_dims=(0,), tile_n=8192):
    """Pallas-backed MLPWithEmbedding forward.

    x:      (..., D_total), feature-last
    params: dict with we, be, w0, b0, w1, b1, w2, b2 (weights stored (in, out))
    """
    d_total = x.shape[-1]
    ignore = tuple(ignore_dims) if ignore_dims is not None else ()
    active = tuple(d for d in range(d_total) if d not in ignore)
    num_ignore = len(ignore)

    # compress_batch_dimensions: flatten leading dims into rows, then go
    # feature-major so the row count rides the 128-lane axis in the kernel.
    lead = x.shape[:-1]
    n_rows = 1
    for s in lead:
        n_rows *= s
    xT = x.reshape(n_rows, d_total).T                                   # (D_total, N)

    hi = jax.lax.Precision.HIGHEST
    # Fold embedding into layer 0 (exact: linear o linear), transpose weights to
    # (out, in), and scatter the folded layer-0 columns onto the active input
    # positions; ignore columns stay zero so the kernel never slices x.
    w0f = jnp.dot(params["we"], params["w0"], precision=hi)             # (act, W)
    b0f = jnp.dot(params["be"], params["w0"], precision=hi) + params["b0"]  # (1, W)
    width = w0f.shape[1]
    w0t = jnp.zeros((width, d_total), jnp.float32)
    w0t = w0t.at[:, jnp.array(active, dtype=jnp.int32)].set(w0f.T)
    b0t = b0f.T                                                          # (W, 1)
    w1t, b1t = params["w1"].T, params["b1"].T                            # (W, W), (W, 1)
    w2t, b2t = params["w2"].T, params["b2"].T                            # (O, W), (O, 1)
    out_dim = w2t.shape[0]
    out_total = num_ignore + out_dim

    # Lane tiling (lane axis must be a multiple of 128); pad columns to a whole
    # number of tiles so every grid step sees a full block.
    tn = _round_up(min(tile_n, _round_up(n_rows, 128)), 128)
    n_pad = _round_up(n_rows, tn)
    if n_pad != n_rows:
        xT = jnp.pad(xT, ((0, 0), (0, n_pad - n_rows)))
    grid = (n_pad // tn,)

    flops = 2 * n_pad * (d_total * width + width * width + width * out_dim)
    bytes_accessed = 4 * (
        d_total * n_pad + out_total * n_pad
        + w0t.size + b0t.size + w1t.size + b1t.size + w2t.size + b2t.size
    )

    kernel = functools.partial(_mlp_kernel, ignore_dims=ignore)
    const = lambda i: (0, 0)   # weights: same block every step -> VMEM resident

    result = pl.pallas_call(
        kernel,
        out_shape=jax.ShapeDtypeStruct((out_total, n_pad), x.dtype),
        grid=grid,
        in_specs=[
            pl.BlockSpec((d_total, tn), lambda i: (0, i)),
            pl.BlockSpec(w0t.shape, const), pl.BlockSpec(b0t.shape, const),
            pl.BlockSpec(w1t.shape, const), pl.BlockSpec(b1t.shape, const),
            pl.BlockSpec(w2t.shape, const), pl.BlockSpec(b2t.shape, const),
        ],
        out_specs=pl.BlockSpec((out_total, tn), lambda i: (0, i)),
        compiler_params=pltpu.CompilerParams(
            dimension_semantics=("parallel",),   # independent lane tiles
            vmem_limit_bytes=32 * 1024 * 1024,
        ),
        cost_estimate=pl.CostEstimate(
            flops=flops, transcendentals=0, bytes_accessed=bytes_accessed),
    )(xT, w0t, b0t, w1t, b1t, w2t, b2t)

    # Single layout pass back to feature-last; padded columns are trimmed here
    # (the slice fuses into the transpose).
    out = result[:, :n_rows].T
    return out.reshape(lead + (out_total,))


# ---------------------------------------------------------------------------
# Deterministic parameter init (PyTorch nn.Linear default: U(+-1/sqrt(fan_in)))
# ---------------------------------------------------------------------------
def _init_linear(key, fan_in, fan_out, dtype=jnp.float32):
    kw, kb = jax.random.split(key)
    bound = 1.0 / (fan_in ** 0.5)
    w = jax.random.uniform(kw, (fan_in, fan_out), dtype, -bound, bound)
    b = jax.random.uniform(kb, (1, fan_out), dtype, -bound, bound)
    return w, b


def make_params(key, active_dim, emb_dim, width, out_dim):
    k_e, k0, k1, k2 = jax.random.split(key, 4)
    we, be = _init_linear(k_e, active_dim, emb_dim)
    w0, b0 = _init_linear(k0, emb_dim, width)
    w1, b1 = _init_linear(k1, width, width)
    w2, b2 = _init_linear(k2, width, out_dim)
    return dict(we=we, be=be, w0=w0, b0=b0, w1=w1, b1=b1, w2=w2, b2=b2)


# ---------------------------------------------------------------------------
# Pure-JAX reference (mirrors the PyTorch module, unfolded, f32-exact matmuls).
# ---------------------------------------------------------------------------
def reference(x, params, ignore_dims=(0,)):
    hi = jax.lax.Precision.HIGHEST
    d_total = x.shape[-1]
    ignore = tuple(ignore_dims) if ignore_dims is not None else ()
    active = [d for d in range(d_total) if d not in ignore]
    x_act = x[..., active]
    h = jnp.dot(x_act, params["we"], precision=hi) + params["be"][0]
    h = jnp.dot(h, params["w0"], precision=hi) + params["b0"][0]
    h = jax.nn.relu(h)
    h = jnp.dot(h, params["w1"], precision=hi) + params["b1"][0]
    h = jax.nn.relu(h)
    h = jnp.dot(h, params["w2"], precision=hi) + params["b2"][0]
    if ignore:
        return jnp.concatenate([x[..., list(ignore)], h], axis=-1)
    return h


if __name__ == "__main__":
    D_TOTAL = 5
    IGNORE_DIMS = (0,)
    EMB_DIM, WIDTH, OUT_DIM = 32, 32, 16
    ACTIVE = D_TOTAL - len(IGNORE_DIMS)

    key = jax.random.PRNGKey(0)
    k_x1, k_x2, k_p = jax.random.split(key, 3)
    params = make_params(k_p, ACTIVE, EMB_DIM, WIDTH, OUT_DIM)

    # Test 1: small shape from the module spec (batch=2, seq=8).
    x = jax.random.normal(k_x1, (2, 8, D_TOTAL), dtype=jnp.float32)
    out = jax.block_until_ready(mlp_with_embedding(x, params, ignore_dims=IGNORE_DIMS))
    ref = reference(x, params, ignore_dims=IGNORE_DIMS)
    assert out.shape == (2, 8, len(IGNORE_DIMS) + OUT_DIM), out.shape
    assert jnp.allclose(out, ref, atol=1e-4, rtol=1e-4), "mismatch vs reference (small)"
    # Ignored columns must pass through bit-exactly (no arithmetic on them).
    assert jnp.array_equal(out[..., :len(IGNORE_DIMS)], x[..., list(IGNORE_DIMS)])

    # Test 2: exercise multi-step lane grid + ragged column padding (tile_n=512).
    x_big = jax.random.normal(k_x2, (3, 1000, D_TOTAL), dtype=jnp.float32)
    out_big = jax.block_until_ready(
        mlp_with_embedding(x_big, params, ignore_dims=IGNORE_DIMS, tile_n=512))
    ref_big = reference(x_big, params, ignore_dims=IGNORE_DIMS)
    assert out_big.shape == (3, 1000, len(IGNORE_DIMS) + OUT_DIM), out_big.shape
    assert jnp.allclose(out_big, ref_big, atol=1e-4, rtol=1e-4), "mismatch vs reference (tiled)"

    print("KERNEL_OK")
</pallas_src>

<mosaic_0001>
module attributes {stable_mosaic.version = 11 : i64} {
  func.func @_mlp_kernel(%arg0: i32, %arg1: memref<5x128xf32, #tpu.memory_space<vmem>>, %arg2: memref<32x5xf32, #tpu.memory_space<vmem>>, %arg3: memref<32x1xf32, #tpu.memory_space<vmem>>, %arg4: memref<32x32xf32, #tpu.memory_space<vmem>>, %arg5: memref<32x1xf32, #tpu.memory_space<vmem>>, %arg6: memref<16x32xf32, #tpu.memory_space<vmem>>, %arg7: memref<16x1xf32, #tpu.memory_space<vmem>>, %arg8: memref<17x128xf32, #tpu.memory_space<vmem>>) attributes {dimension_semantics = [#tpu.dimension_semantics<parallel>], iteration_bounds = array<i64: 1>, scalar_prefetch = 0 : i64, scratch_operands = 0 : i64, tpu.core_type = #tpu.core_type<tc>, window_params = [{transform_indices = @transform_0, window_bounds = array<i64: 5, 128>}, {pipeline_mode = #tpu.pipeline_mode<synchronous>, transform_indices = @transform_1, window_bounds = array<i64: 32, 5>}, {pipeline_mode = #tpu.pipeline_mode<synchronous>, transform_indices = @transform_2, window_bounds = array<i64: 32, 1>}, {pipeline_mode = #tpu.pipeline_mode<synchronous>, transform_indices = @transform_3, window_bounds = array<i64: 32, 32>}, {pipeline_mode = #tpu.pipeline_mode<synchronous>, transform_indices = @transform_4, window_bounds = array<i64: 32, 1>}, {pipeline_mode = #tpu.pipeline_mode<synchronous>, transform_indices = @transform_5, window_bounds = array<i64: 16, 32>}, {pipeline_mode = #tpu.pipeline_mode<synchronous>, transform_indices = @transform_6, window_bounds = array<i64: 16, 1>}, {transform_indices = @transform_7, window_bounds = array<i64: 17, 128>}]} {
    %c0 = arith.constant 0 : index
    %c0_0 = arith.constant 0 : index
    %0 = vector.load %arg1[%c0, %c0_0] : memref<5x128xf32, #tpu.memory_space<vmem>>, vector<5x128xf32>
    %c0_1 = arith.constant 0 : index
    %c0_2 = arith.constant 0 : index
    %1 = vector.load %arg2[%c0_1, %c0_2] : memref<32x5xf32, #tpu.memory_space<vmem>>, vector<32x5xf32>
    %cst = arith.constant dense<0.000000e+00> : vector<32x128xf32>
    %2 = tpu.matmul %1, %0, %cst {dimension_numbers = #tpu.dot_dimension_numbers<[1], [0], [0], [1], [0, 0, 1, 1], [], []>} : vector<32x5xf32>, vector<5x128xf32>, vector<32x128xf32> -> vector<32x128xf32>
    %c0_3 = arith.constant 0 : index
    %c0_4 = arith.constant 0 : index
    %3 = vector.load %arg3[%c0_3, %c0_4] : memref<32x1xf32, #tpu.memory_space<vmem>>, vector<32x1xf32>
    %4 = vector.broadcast %3 : vector<32x1xf32> to vector<32x128xf32>
    %5 = arith.addf %2, %4 : vector<32x128xf32>
    %cst_5 = arith.constant 0.000000e+00 : f32
    %6 = vector.broadcast %cst_5 : f32 to vector<32x128xf32>
    %7 = arith.maximumf %5, %6 : vector<32x128xf32>
    %c0_6 = arith.constant 0 : index
    %c0_7 = arith.constant 0 : index
    %8 = vector.load %arg4[%c0_6, %c0_7] : memref<32x32xf32, #tpu.memory_space<vmem>>, vector<32x32xf32>
    %cst_8 = arith.constant dense<0.000000e+00> : vector<32x128xf32>
    %9 = tpu.matmul %8, %7, %cst_8 {dimension_numbers = #tpu.dot_dimension_numbers<[1], [0], [0], [1], [0, 0, 1, 1], [], []>} : vector<32x32xf32>, vector<32x128xf32>, vector<32x128xf32> -> vector<32x128xf32>
    %c0_9 = arith.constant 0 : index
    %c0_10 = arith.constant 0 : index
    %10 = vector.load %arg5[%c0_9, %c0_10] : memref<32x1xf32, #tpu.memory_space<vmem>>, vector<32x1xf32>
    %11 = vector.broadcast %10 : vector<32x1xf32> to vector<32x128xf32>
    %12 = arith.addf %9, %11 : vector<32x128xf32>
    %cst_11 = arith.constant 0.000000e+00 : f32
    %13 = vector.broadcast %cst_11 : f32 to vector<32x128xf32>
    %14 = arith.maximumf %12, %13 : vector<32x128xf32>
    %c0_12 = arith.constant 0 : index
    %c0_13 = arith.constant 0 : index
    %15 = vector.load %arg6[%c0_12, %c0_13] : memref<16x32xf32, #tpu.memory_space<vmem>>, vector<16x32xf32>
    %cst_14 = arith.constant dense<0.000000e+00> : vector<16x128xf32>
    %16 = tpu.matmul %15, %14, %cst_14 {dimension_numbers = #tpu.dot_dimension_numbers<[1], [0], [0], [1], [0, 0, 1, 1], [], []>} : vector<16x32xf32>, vector<32x128xf32>, vector<16x128xf32> -> vector<16x128xf32>
    %c0_15 = arith.constant 0 : index
    %c0_16 = arith.constant 0 : index
    %17 = vector.load %arg7[%c0_15, %c0_16] : memref<16x1xf32, #tpu.memory_space<vmem>>, vector<16x1xf32>
    %18 = vector.broadcast %17 : vector<16x1xf32> to vector<16x128xf32>
    %19 = arith.addf %16, %18 : vector<16x128xf32>
    %c0_17 = arith.constant 0 : index
    %c0_18 = arith.constant 0 : index
    %20 = vector.load %arg1[%c0_17, %c0_18] : memref<5x128xf32, #tpu.memory_space<vmem>>, vector<1x128xf32>
    %c0_19 = arith.constant 0 : index
    %c0_20 = arith.constant 0 : index
    %21 = vector.load %arg8[%c0_19, %c0_20] : memref<17x128xf32, #tpu.memory_space<vmem>>, vector<1x128xf32>
    tpu.vector_store %arg8[%c0_19, %c0_20], %20 {strides = array<i32>} : memref<17x128xf32, #tpu.memory_space<vmem>>, vector<1x128xf32>,
    %c1 = arith.constant 1 : index
    %c0_21 = arith.constant 0 : index
    %22 = vector.load %arg8[%c1, %c0_21] : memref<17x128xf32, #tpu.memory_space<vmem>>, vector<16x128xf32>
    tpu.vector_store %arg8[%c1, %c0_21], %19 {strides = array<i32>} : memref<17x128xf32, #tpu.memory_space<vmem>>, vector<16x128xf32>,
    return
  }
  func.func @transform_0(%arg0: i32) -> (i32, i32) {
    %c0_i32 = arith.constant 0 : i32
    %c0_i32_0 = arith.constant 0 : i32
    return %c0_i32, %arg0 : i32, i32
  }
  func.func @transform_1(%arg0: i32) -> (i32, i32) {
    %c0_i32 = arith.constant 0 : i32
    %c0_i32_0 = arith.constant 0 : i32
    %c0_i32_1 = arith.constant 0 : i32
    return %c0_i32, %c0_i32_0 : i32, i32
  }
  func.func @transform_2(%arg0: i32) -> (i32, i32) {
    %c0_i32 = arith.constant 0 : i32
    %c0_i32_0 = arith.constant 0 : i32
    %c0_i32_1 = arith.constant 0 : i32
    return %c0_i32, %c0_i32_0 : i32, i32
  }
  func.func @transform_3(%arg0: i32) -> (i32, i32) {
    %c0_i32 = arith.constant 0 : i32
    %c0_i32_0 = arith.constant 0 : i32
    %c0_i32_1 = arith.constant 0 : i32
    return %c0_i32, %c0_i32_0 : i32, i32
  }
  func.func @transform_4(%arg0: i32) -> (i32, i32) {
    %c0_i32 = arith.constant 0 : i32
    %c0_i32_0 = arith.constant 0 : i32
    %c0_i32_1 = arith.constant 0 : i32
    return %c0_i32, %c0_i32_0 : i32, i32
  }
  func.func @transform_5(%arg0: i32) -> (i32, i32) {
    %c0_i32 = arith.constant 0 : i32
    %c0_i32_0 = arith.constant 0 : i32
    %c0_i32_1 = arith.constant 0 : i32
    return %c0_i32, %c0_i32_0 : i32, i32
  }
  func.func @transform_6(%arg0: i32) -> (i32, i32) {
    %c0_i32 = arith.constant 0 : i32
    %c0_i32_0 = arith.constant 0 : i32
    %c0_i32_1 = arith.constant 0 : i32
    return %c0_i32, %c0_i32_0 : i32, i32
  }
  func.func @transform_7(%arg0: i32) -> (i32, i32) {
    %c0_i32 = arith.constant 0 : i32
    %c0_i32_0 = arith.constant 0 : i32
    return %c0_i32, %arg0 : i32, i32
  }
}

</mosaic_0001>

<bundles_post_ra>
// kernel: mlp_with_embedding.1
= control target key start
LH: loop header
LB: loop body
LE: loop exit
PB: predicated region body
PF: predicated region fallthrough
CT: control target
= control target key end

     0   :  { %vm68_vm0 = vcmask 1044480   ;;  %vm55_vm1 = vcmask 39936   ;;  %v250_v0 = vmov 0   ;;  %vm133_vm2 = vcmask 261120   ;;  %s378_s2 = inlined_call_operand.vmem [shape: f32[32,1], index: 2, kind: input, shape index: {}]   ;;  %s379_s0 = inlined_call_operand.vmem [shape: f32[5,128], index: 0, kind: input, shape index: {}]   ;;  %s380_s1 = inlined_call_operand.vmem [shape: f32[32,5], index: 1, kind: input, shape index: {}]   ;;  %s381_s7 = inlined_call_operand.vmem [shape: f32[17,128], index: 7, kind: output, shape index: {}]   ;;  %s382_s4 = inlined_call_operand.vmem [shape: f32[32,1], index: 4, kind: input, shape index: {}]   ;;  %s383_s6 = inlined_call_operand.vmem [shape: f32[16,1], index: 6, kind: input, shape index: {}]   ;;  %s384_s3 = inlined_call_operand.vmem [shape: f32[32,32], index: 3, kind: input, shape index: {}]   ;;  %s385_s5 = inlined_call_operand.vmem [shape: f32[16,32], index: 5, kind: input, shape index: {}]  }
   0x1   :  { %247 = vset.pattern.permute.xlu0 %v250_v0  ;;  %v34_v1 = vld [vmem:[%s378_s2 + $0x18] sm:$0xff]  ;;  %v26_v2 = vld [vmem:[%s379_s0] sm:$0x1f]  ;;  %248 = vset.pattern.permute.xlu1 %v250_v0  ;;  %v32_v5 = vld [vmem:[%s378_s2 + $0x8] sm:$0xff] }
   0x2   :  { %v222_v3 = vld [vmem:[%s379_s0] sm:$0x1]  ;;  %52 = vperm.xlu0 %247, %v34_v1   ;;  %230 = vmatpush.msk.msra.mxu0 %vm68_vm0, %v26_v2  ;;  %v30_v6 = vld [vmem:[%s380_s1 + $0x18] sm:$0xff]  ;;  %v33_v7 = vld [vmem:[%s378_s2 + $0x10] sm:$0xff] }
   0x3   :  { %223 = vst [vmem:[%s381_s7] sm:$0x1] %v222_v3  ;;  %v27_v4 = vld [vmem:[%s380_s1] sm:$0xff]  ;;  %42 = vperm.xlu1 %248, %v32_v5   ;;  %241 = vmatpush.msk.msra.mxu1 %vm68_vm0, %v26_v2  ;;  %v28_v8 = vld [vmem:[%s380_s1 + $0x8] sm:$0xff]  ;;  %v29_v11 = vld [vmem:[%s380_s1 + $0x10] sm:$0xff] }
   0x4   :  { %231 = vmatmul.msk.f32.vlgmr.msra.gmra.mxu0 %vm55_vm1, %v27_v4  ;;  %249 = vset.pattern.permute.xlu2 %v250_v0  ;;  %v31_v9 = vld [vmem:[%s378_s2] sm:$0xff]  ;;  %v110_v10 = vld [vmem:[%s382_s4 + $0x8] sm:$0xff]  ;;  %v112_v21 = vld [vmem:[%s382_s4 + $0x18] sm:$0xff] }
   0x5   :  { %234 = vmatmul.msk.f32.vlgmr.msra.gmra.mxu1 %vm55_vm1, %v30_v6  ;;  %v109_v12 = vld [vmem:[%s382_s4] sm:$0xff]  ;;  %v182_v13 = vld [vmem:[%s383_s6 + $0x8] sm:$0xff]  ;;  %130 = vperm.xlu2 %249, %v112_v21   ;;  %v111_v25 = vld [vmem:[%s382_s4 + $0x10] sm:$0xff] }
   0x6   :  { %v105_v32 = vld [vmem:[%s384_s3] sm:$0xff]  ;;  %v106_v33 = vld [vmem:[%s384_s3 + $0x8] sm:$0xff]  ;;  %v107_v35 = vld [vmem:[%s384_s3 + $0x10] sm:$0xff] }
   0x7   :  { %v181_v34 = vld [vmem:[%s383_s6] sm:$0xff]  ;;  %v108_v36 = vld [vmem:[%s384_s3 + $0x18] sm:$0xff]  ;;  %v180_v54 = vld [vmem:[%s385_s5 + $0x8] sm:$0xff] }
   0x8   :  { %v179_v53 = vld [vmem:[%s385_s5] sm:$0xff] }
   0xa   :  { %47 = vperm.xlu0 %247, %v33_v7  }
   0xb   :  { %37 = vperm.xlu1 %248, %v31_v9  }
   0xc   :  { %232 = vmatmul.msk.f32.gmra.mxu0 %vm55_vm1, %v28_v8 }
   0xd   :  { %125 = vperm.xlu2 %249, %v111_v25  }
  0x12   :  { %120 = vperm.xlu0 %247, %v110_v10  }
  0x13   :  { %115 = vperm.xlu1 %248, %v109_v12  }
  0x14   :  { %233 = vmatmul.msk.f32.gmra.mxu0 %vm55_vm1, %v29_v11 }
  0x15   :  { %185 = vperm.xlu2 %249, %v181_v34  }
  0x1a   :  { %190 = vperm.xlu0 %247, %v182_v13  }
  0x5f   :  { %v131_v38 = vpop.permute.xlu2 %130 }
  0x67   :  { %v126_v40 = vpop.permute.xlu2 %125 }
  0x6f   :  { %v186_v55 = vpop.permute.xlu2 %185 }
  0x74   :  { %v53_v15 = vpop.permute.xlu0 %52 }
  0x75   :  { %v43_v19 = vpop.permute.xlu1 %42 }
  0x7c   :  { %v48_v22 = vpop.permute.xlu0 %47 }
  0x7d   :  { %v38_v23 = vpop.permute.xlu1 %37 }
  0x81   :  { %v89_v14 = vpop.f32.mrf.mxu0 }
  0x82   :  { %v98_v16 = vpop.f32.mrf.mxu1  ;;  %v90_v28 = vadd.f32 %v89_v14, %v38_v23 }
  0x83   :  { %v99_v17 = vadd.f32 %v98_v16, %v53_v15 }
  0x84   :  { %v101_v31 = vmax.f32 %v90_v28, 0.0  ;;  %v121_v44 = vpop.permute.xlu0 %120 }
  0x85   :  { %v104_v18 = vmax.f32 %v99_v17, 0.0  ;;  %v116_v48 = vpop.permute.xlu1 %115 }
  0x87   :  { %158 = vmatpush.msrb.mxu1 %v104_v18  ;;  %242 = vmatpush.msra.mxu3 %v104_v18 }
  0x89   :  { %v92_v20 = vpop.f32.mrf.mxu0 }
  0x8a   :  { %v93_v26 = vadd.f32 %v92_v20, %v43_v19 }
  0x8c   :  { %v102_v30 = vmax.f32 %v93_v26, 0.0  ;;  %v191_v58 = vpop.permute.xlu0 %190 }
  0x91   :  { %v95_v24 = vpop.f32.mrf.mxu0 }
  0x92   :  { %v96_v27 = vadd.f32 %v95_v24, %v48_v22 }
  0x94   :  { %v103_v29 = vmax.f32 %v96_v27, 0.0 }
  0x96   :  { %159 = vmatpush.msrb.mxu1 %v103_v29  ;;  %243 = vmatpush.msra.mxu3 %v103_v29 }
  0x98   :  { %160 = vmatpush.msrb.mxu1 %v102_v30  ;;  %244 = vmatpush.msra.mxu3 %v102_v30 }
  0x9a   :  { %161 = vmatpush.msrb.mxu1 %v101_v31  ;;  %245 = vmatpush.msra.mxu3 %v101_v31 }
  0x9b   :  { %235 = vmatmul.msk.f32.vlgmr.msrb.gmra.mxu1 %vm133_vm2, %v105_v32  ;;  %236 = vmatmul.msk.f32.vlgmr.msra.gmra.mxu3 %vm133_vm2, %v106_v33 }
  0xa3   :  { %237 = vmatmul.msk.f32.gmra.mxu3 %vm133_vm2, %v107_v35 }
  0xab   :  { %238 = vmatmul.msk.f32.gmra.mxu3 %vm133_vm2, %v108_v36 }
 0x118   :  { %v163_v45 = vpop.f32.mrf.mxu1 }
 0x119   :  { %v164_v49 = vadd.f32 %v163_v45, %v116_v48 }
 0x11b   :  { %v175_v52 = vmax.f32 %v164_v49, 0.0 }
 0x11e   :  { %v166_v37 = vpop.f32.mrf.mxu3 }
 0x11f   :  { %v167_v46 = vadd.f32 %v166_v37, %v121_v44 }
 0x121   :  { %v176_v51 = vmax.f32 %v167_v46, 0.0 }
 0x126   :  { %v169_v39 = vpop.f32.mrf.mxu3 }
 0x127   :  { %v170_v42 = vadd.f32 %v169_v39, %v126_v40 }
 0x129   :  { %v177_v50 = vmax.f32 %v170_v42, 0.0 }
 0x12e   :  { %v172_v41 = vpop.f32.mrf.mxu3 }
 0x12f   :  { %v173_v43 = vadd.f32 %v172_v41, %v131_v38 }
 0x131   :  { %v178_v47 = vmax.f32 %v173_v43, 0.0 }
 0x133   :  { %211 = vmatpush.msra.mxu2 %v178_v47 }
 0x135   :  { %212 = vmatpush.msra.mxu2 %v177_v50 }
 0x137   :  { %213 = vmatpush.msra.mxu2 %v176_v51 }
 0x139   :  { %214 = vmatpush.msra.mxu2 %v175_v52 }
 0x13a   :  { %239 = vmatmul.msk.f32.vlgmr.msra.gmra.mxu2 %vm133_vm2, %v179_v53 }
 0x142   :  { %240 = vmatmul.msk.f32.gmra.mxu2 %vm133_vm2, %v180_v54 }
 0x1bd   :  { %v216_v56 = vpop.f32.mrf.mxu2 }
 0x1be   :  { %v217_v57 = vadd.f32 %v216_v56, %v186_v55 }
 0x1c0   :  { %224 = vst [vmem:[%s381_s7 + $0x1] sm:$0xff] %v217_v57 }
 0x1c5   :  { %v219_v59 = vpop.f32.mrf.mxu2 }
 0x1c6   :  { %v220_v60 = vadd.f32 %v219_v59, %v191_v58 }
 0x1c8   :  { %225 = vst [vmem:[%s381_s7 + $0x9] sm:$0xff] %v220_v60 }

</bundles_post_ra>
